<compile_context>
chip_gen: v7x
topology: tpu7x:2x2x1
jax: 0.10.0
libtpu: 0.0.40
codegen_flags: <defaults>
</compile_context>

<pallas_src>
import functools

import jax
import jax.numpy as jnp
from jax.experimental import pallas as pl
from jax.experimental.pallas import tpu as pltpu


def _round_up(x, m):
    return ((x + m - 1) // m) * m


def _sublane_multiple(itemsize):
    # Sub-32-bit dtypes pack along sublanes (bf16 rows travel in pairs, etc.).
    return {4: 8, 2: 16, 1: 32}.get(itemsize, 8)


def _choose_tiles(N, C, itemsize, batch_tile=None, class_tile=None):
    """VMEM-budgeted tile selection: streamed logits buffer ~<= 4 MiB
    (double-buffered -> ~8 MiB live), safe on v5e/v6e/v7x scoped limits."""
    row_mult = _sublane_multiple(itemsize)
    n_cap = _round_up(max(N, 1), row_mult)
    target_bytes = 4 << 20                     # per streamed logits buffer

    # --- class tile -----------------------------------------------------
    if class_tile is not None:
        tc = min(int(class_tile), C)
        if tc < C:
            assert tc % 128 == 0, "class_tile must be a multiple of 128"
    elif C * itemsize * 64 <= target_bytes:
        # >=64 rows of the full class dim fit in the budget: single class tile.
        tc = C
    else:
        # Vocab-scale C: tile the class axis (online LSE across class tiles)
        # so the batch tile stays roofline-sized.
        base_tm = max(min(n_cap, 512), row_mult)
        tc = (target_bytes // (base_tm * itemsize)) // 128 * 128
        tc = int(max(min(tc, _round_up(C, 128)), 128))

    # --- batch tile -----------------------------------------------------
    if batch_tile is not None:
        tm = _round_up(min(int(batch_tile), n_cap), row_mult)
    else:
        tm = (target_bytes // max(tc * itemsize, 1)) // row_mult * row_mult
        tm = int(max(min(tm, 1024, n_cap), row_mult))
    return tm, tc


def _wce_kernel(x_ref, tgt_ref, w_ref, out_ref, m_sc, l_sc, p_sc, *,
                n_rows, n_cols, mask_cols):
    """Class-weighted CE partial sums.

    Grid: (batch tiles [parallel], class tiles [arbitrary/reduction]).
    x_ref   : [tm, tc] logits tile (native dtype, cast to f32 here)
    tgt_ref : [tm, 1]  int32 target class per row
    w_ref   : [tm, 1]  f32 per-row class weight (gather hoisted to wrapper)
    out_ref : [1, 1, 128] per-batch-tile partial weighted-NLL sum (broadcast)
    m_sc/l_sc/p_sc : [tm, 1] running max / running sum-exp / picked logit
    """
    i = pl.program_id(0)            # batch tile
    j = pl.program_id(1)            # class tile
    tm, tc = x_ref.shape

    @pl.when(j == 0)
    def _init():
        m_sc[...] = jnp.full_like(m_sc, -jnp.inf)
        l_sc[...] = jnp.zeros_like(l_sc)
        p_sc[...] = jnp.zeros_like(p_sc)

    x = x_ref[...].astype(jnp.float32)                               # [tm, tc]
    cls = j * tc + jax.lax.broadcasted_iota(jnp.int32, (tm, tc), 1)  # [tm, tc]
    if mask_cols:
        # Ragged last class tile: padded columns must not affect max / lse.
        x = jnp.where(cls < n_cols, x, -jnp.inf)

    # Online (flash-style) log-sum-exp across class tiles.
    m_prev = m_sc[...]
    m_new = jnp.maximum(m_prev, jnp.max(x, axis=-1, keepdims=True))  # [tm, 1]
    l_sc[...] = (l_sc[...] * jnp.exp(m_prev - m_new)
                 + jnp.sum(jnp.exp(x - m_new), axis=-1, keepdims=True))
    m_sc[...] = m_new

    # Target-logit gather via one-hot select: the target class lands in
    # exactly one class tile, so the running sum picks it exactly once.
    onehot = cls == tgt_ref[...]                                     # [tm, tc]
    p_sc[...] += jnp.sum(jnp.where(onehot, x, 0.0), axis=-1, keepdims=True)

    @pl.when(j == pl.num_programs(1) - 1)
    def _finalize():
        rows = i * tm + jax.lax.broadcasted_iota(jnp.int32, (tm, 1), 0)
        valid = rows < n_rows                                        # [tm, 1]
        nll = m_sc[...] + jnp.log(l_sc[...]) - p_sc[...]             # [tm, 1]
        # Mask AFTER the product: padded rows of a ragged last batch tile hold
        # garbage logits (possibly NaN/Inf), and 0 * NaN = NaN otherwise.
        contrib = jnp.where(valid, w_ref[...] * nll, 0.0)
        out_ref[...] = jnp.full((1, 1, 128), jnp.sum(contrib), jnp.float32)


def weighted_ce_loss(inputs, targets, weights, *, batch_tile=None,
                     class_tile=None):
    """Equivalent of torch.nn.functional.cross_entropy(inputs, targets, weights).

    inputs : [N, C] float logits (f32 or bf16; streamed in native dtype)
    targets: [N]    integer class indices
    weights: [C]    per-class weights
    Returns the scalar weighted-mean loss (f32).
    """
    N, C = inputs.shape
    itemsize = jnp.dtype(inputs.dtype).itemsize
    tm, tc = _choose_tiles(N, C, itemsize, batch_tile, class_tile)
    nb = pl.cdiv(N, tm)
    nc = pl.cdiv(C, tc)
    mask_cols = (tc < C) and (C % tc != 0)

    tgt2d = targets.astype(jnp.int32).reshape(N, 1)
    # Hoisted class-weight gather: one cheap XLA gather instead of a per-tile
    # [tm, C] one-hot select + cross-lane reduction inside the kernel.
    w_row = weights.astype(jnp.float32)[targets].reshape(N, 1)

    kernel = functools.partial(_wce_kernel, n_rows=N, n_cols=C,
                               mask_cols=mask_cols)

    # Live VMEM: double-buffered logits stream + (lane-padded) [tm,1] side
    # channels + scratch + tiny output blocks. Budgeted to fit every
    # generation (incl. v7x's 64 MiB per-TC VMEM) with headroom.
    vmem_used = (2 * tm * tc * itemsize      # logits (double-buffered)
                 + 4 * tm * 512              # targets + row-weights buffers
                 + 3 * tm * 512              # m / l / picked scratch
                 + 2 * 512)                  # partial-sum output blocks
    vmem_limit = int(min(max(32 << 20, (3 * vmem_used) // 2), 48 << 20))

    cost = pl.CostEstimate(
        flops=int(6 * N * C),
        transcendentals=int(N * C),
        bytes_accessed=int(N * C * itemsize + 8 * N + 512 * nb))

    partials = pl.pallas_call(
        kernel,
        out_shape=jax.ShapeDtypeStruct((nb, 1, 128), jnp.float32),
        grid_spec=pltpu.PrefetchScalarGridSpec(
            num_scalar_prefetch=0,
            grid=(nb, nc),
            in_specs=[
                pl.BlockSpec((tm, tc), lambda i, j: (i, j)),  # streamed logits
                pl.BlockSpec((tm, 1), lambda i, j: (i, 0)),   # targets
                pl.BlockSpec((tm, 1), lambda i, j: (i, 0)),   # per-row weights
            ],
            out_specs=pl.BlockSpec((1, 1, 128), lambda i, j: (i, 0, 0)),
            scratch_shapes=[
                pltpu.VMEM((tm, 1), jnp.float32),   # running max
                pltpu.VMEM((tm, 1), jnp.float32),   # running sum-exp
                pltpu.VMEM((tm, 1), jnp.float32),   # picked target logit
            ],
        ),
        compiler_params=pltpu.CompilerParams(
            # Batch tiles are independent (each writes its own partial row) ->
            # "parallel" lets megacore (v7x: 2 TCs) shard them; the class axis
            # is an in-scratch reduction -> "arbitrary".
            dimension_semantics=("parallel", "arbitrary"),
            vmem_limit_bytes=vmem_limit),
        cost_estimate=cost,
    )(inputs, tgt2d, w_row)

    num = jnp.sum(partials[:, 0, 0])
    den = jnp.sum(w_row)          # sum_i w[y_i]  (0/0 -> NaN, same as PyTorch)
    return num / den


def reference_wce(inputs, targets, weights):
    """Pure-JAX reference matching F.cross_entropy(..., weight=weights)."""
    logp = jax.nn.log_softmax(inputs.astype(jnp.float32), axis=-1)
    nll = -jnp.take_along_axis(logp, targets[:, None], axis=-1)[:, 0]
    w = weights.astype(jnp.float32)[targets]
    return jnp.sum(w * nll) / jnp.sum(w)


if __name__ == "__main__":
    key = jax.random.PRNGKey(0)

    def check(N, C, dtype=jnp.float32, batch_tile=None, class_tile=None,
              tol=1e-4):
        k = jax.random.fold_in(key, N * 100003 + C)
        kx, kt, kw = jax.random.split(k, 3)
        x = jax.random.normal(kx, (N, C), dtype=jnp.float32).astype(dtype)
        t = jax.random.randint(kt, (N,), 0, C, dtype=jnp.int32)
        w = jax.random.uniform(kw, (C,), minval=0.5, maxval=1.5,
                               dtype=jnp.float32)
        got = jax.block_until_ready(
            weighted_ce_loss(x, t, w, batch_tile=batch_tile,
                             class_tile=class_tile))
        ref = reference_wce(x, t, w)
        assert jnp.isfinite(got), f"non-finite loss for N={N} C={C}"
        assert jnp.allclose(got, ref, atol=tol, rtol=tol), (
            f"mismatch N={N} C={C} dtype={dtype}: {got} vs {ref}")

    # Small shapes consistent with the module: [batch, num_classes] logits,
    # [batch] integer targets, [num_classes] class weights.
    check(N=8, C=16)                                      # single tile
    check(N=24, C=16, batch_tile=8)                       # multiple batch tiles
    check(N=20, C=16, batch_tile=8)                       # ragged last batch tile
    check(N=24, C=384, batch_tile=8, class_tile=128)      # online LSE over class tiles
    check(N=24, C=200, batch_tile=8, class_tile=128)      # ragged last class tile
    check(N=24, C=16, dtype=jnp.bfloat16, batch_tile=16)  # bf16 logits stream

    print("KERNEL_OK")
</pallas_src>

<mosaic_0001>
module attributes {stable_mosaic.version = 11 : i64} {
  func.func @_wce_kernel(%arg0: i32, %arg1: i32, %arg2: memref<8x16xf32, #tpu.memory_space<vmem>>, %arg3: memref<8x1xi32, #tpu.memory_space<vmem>>, %arg4: memref<8x1xf32, #tpu.memory_space<vmem>>, %arg5: memref<1x1x128xf32, #tpu.memory_space<vmem>>, %arg6: memref<8x1xf32, #tpu.memory_space<vmem>>, %arg7: memref<8x1xf32, #tpu.memory_space<vmem>>, %arg8: memref<8x1xf32, #tpu.memory_space<vmem>>) attributes {dimension_semantics = [#tpu.dimension_semantics<parallel>, #tpu.dimension_semantics<arbitrary>], iteration_bounds = array<i64: 1, 1>, scalar_prefetch = 0 : i64, scratch_operands = 3 : i64, tpu.core_type = #tpu.core_type<tc>, window_params = [{transform_indices = @transform_0, window_bounds = array<i64: 8, 16>}, {transform_indices = @transform_1, window_bounds = array<i64: 8, 1>}, {transform_indices = @transform_2, window_bounds = array<i64: 8, 1>}, {transform_indices = @transform_3, window_bounds = array<i64: 1, 1, 128>}]} {
    %c0_i32 = arith.constant 0 : i32
    %0 = arith.cmpi eq, %arg1, %c0_i32 : i32
    %1 = arith.extui %0 : i1 to i32
    %c0_i32_0 = arith.constant 0 : i32
    %2 = arith.cmpi ne, %1, %c0_i32_0 : i32
    scf.if %2 {
      %cst_21 = arith.constant 0xFF800000 : f32
      %37 = vector.broadcast %cst_21 : f32 to vector<8x1xf32>
      %c0_22 = arith.constant 0 : index
      %c0_23 = arith.constant 0 : index
      %38 = vector.load %arg6[%c0_22, %c0_23] : memref<8x1xf32, #tpu.memory_space<vmem>>, vector<8x1xf32>
      tpu.vector_store %arg6[%c0_22, %c0_23], %37 {strides = array<i32>} : memref<8x1xf32, #tpu.memory_space<vmem>>, vector<8x1xf32>,
      %cst_24 = arith.constant 0.000000e+00 : f32
      %39 = vector.broadcast %cst_24 : f32 to vector<8x1xf32>
      %c0_25 = arith.constant 0 : index
      %c0_26 = arith.constant 0 : index
      %40 = vector.load %arg7[%c0_25, %c0_26] : memref<8x1xf32, #tpu.memory_space<vmem>>, vector<8x1xf32>
      tpu.vector_store %arg7[%c0_25, %c0_26], %39 {strides = array<i32>} : memref<8x1xf32, #tpu.memory_space<vmem>>, vector<8x1xf32>,
      %cst_27 = arith.constant 0.000000e+00 : f32
      %41 = vector.broadcast %cst_27 : f32 to vector<8x1xf32>
      %c0_28 = arith.constant 0 : index
      %c0_29 = arith.constant 0 : index
      %42 = vector.load %arg8[%c0_28, %c0_29] : memref<8x1xf32, #tpu.memory_space<vmem>>, vector<8x1xf32>
      tpu.vector_store %arg8[%c0_28, %c0_29], %41 {strides = array<i32>} : memref<8x1xf32, #tpu.memory_space<vmem>>, vector<8x1xf32>,
    } else {
    }
    %c0 = arith.constant 0 : index
    %c0_1 = arith.constant 0 : index
    %3 = vector.load %arg2[%c0, %c0_1] : memref<8x16xf32, #tpu.memory_space<vmem>>, vector<8x16xf32>
    %c16_i32 = arith.constant 16 : i32
    %4 = arith.muli %arg1, %c16_i32 : i32
    %5 = tpu.iota {dimensions = array<i32: 1>} : vector<8x16xi32>
    %6 = vector.broadcast %4 : i32 to vector<8x16xi32>
    %7 = arith.addi %6, %5 : vector<8x16xi32>
    %c0_2 = arith.constant 0 : index
    %c0_3 = arith.constant 0 : index
    %8 = vector.load %arg6[%c0_2, %c0_3] : memref<8x1xf32, #tpu.memory_space<vmem>>, vector<8x1xf32>
    %cst = arith.constant dense<0xFF800000> : vector<8xf32>
    %9 = vector.multi_reduction <maximumf>, %3, %cst [1] : vector<8x16xf32> to vector<8xf32>
    %10 = vector.shape_cast %9 : vector<8xf32> to vector<8x1xf32>
    %11 = arith.maximumf %8, %10 : vector<8x1xf32>
    %c0_4 = arith.constant 0 : index
    %c0_5 = arith.constant 0 : index
    %12 = vector.load %arg7[%c0_4, %c0_5] : memref<8x1xf32, #tpu.memory_space<vmem>>, vector<8x1xf32>
    %13 = arith.subf %8, %11 : vector<8x1xf32>
    %14 = math.exp %13 : vector<8x1xf32>
    %15 = arith.mulf %12, %14 : vector<8x1xf32>
    %16 = vector.broadcast %11 : vector<8x1xf32> to vector<8x16xf32>
    %17 = arith.subf %3, %16 : vector<8x16xf32>
    %18 = math.exp %17 : vector<8x16xf32>
    %cst_6 = arith.constant dense<0.000000e+00> : vector<8xf32>
    %19 = vector.multi_reduction <add>, %18, %cst_6 [1] : vector<8x16xf32> to vector<8xf32>
    %20 = vector.shape_cast %19 : vector<8xf32> to vector<8x1xf32>
    %21 = arith.addf %15, %20 : vector<8x1xf32>
    %c0_7 = arith.constant 0 : index
    %c0_8 = arith.constant 0 : index
    %22 = vector.load %arg7[%c0_7, %c0_8] : memref<8x1xf32, #tpu.memory_space<vmem>>, vector<8x1xf32>
    tpu.vector_store %arg7[%c0_7, %c0_8], %21 {strides = array<i32>} : memref<8x1xf32, #tpu.memory_space<vmem>>, vector<8x1xf32>,
    %c0_9 = arith.constant 0 : index
    %c0_10 = arith.constant 0 : index
    %23 = vector.load %arg6[%c0_9, %c0_10] : memref<8x1xf32, #tpu.memory_space<vmem>>, vector<8x1xf32>
    tpu.vector_store %arg6[%c0_9, %c0_10], %11 {strides = array<i32>} : memref<8x1xf32, #tpu.memory_space<vmem>>, vector<8x1xf32>,
    %c0_11 = arith.constant 0 : index
    %c0_12 = arith.constant 0 : index
    %24 = vector.load %arg3[%c0_11, %c0_12] : memref<8x1xi32, #tpu.memory_space<vmem>>, vector<8x1xi32>
    %25 = vector.broadcast %24 : vector<8x1xi32> to vector<8x16xi32>
    %26 = arith.cmpi eq, %7, %25 : vector<8x16xi32>
    %c0_13 = arith.constant 0 : index
    %c0_14 = arith.constant 0 : index
    %27 = vector.load %arg8[%c0_13, %c0_14] : memref<8x1xf32, #tpu.memory_space<vmem>>, vector<8x1xf32>
    %cst_15 = arith.constant 0.000000e+00 : f32
    %28 = vector.broadcast %cst_15 : f32 to vector<8x16xf32>
    %29 = arith.select %26, %3, %28 : vector<8x16xi1>, vector<8x16xf32>
    %cst_16 = arith.constant dense<0.000000e+00> : vector<8xf32>
    %30 = vector.multi_reduction <add>, %29, %cst_16 [1] : vector<8x16xf32> to vector<8xf32>
    %31 = vector.shape_cast %30 : vector<8xf32> to vector<8x1xf32>
    %32 = arith.addf %27, %31 : vector<8x1xf32>
    %c0_17 = arith.constant 0 : index
    %c0_18 = arith.constant 0 : index
    %33 = vector.load %arg8[%c0_17, %c0_18] : memref<8x1xf32, #tpu.memory_space<vmem>>, vector<8x1xf32>
    tpu.vector_store %arg8[%c0_17, %c0_18], %32 {strides = array<i32>} : memref<8x1xf32, #tpu.memory_space<vmem>>, vector<8x1xf32>,
    %c0_i32_19 = arith.constant 0 : i32
    %34 = arith.cmpi eq, %arg1, %c0_i32_19 : i32
    %35 = arith.extui %34 : i1 to i32
    %c0_i32_20 = arith.constant 0 : i32
    %36 = arith.cmpi ne, %35, %c0_i32_20 : i32
    scf.if %36 {
      %c8_i32 = arith.constant 8 : i32
      %37 = arith.muli %arg0, %c8_i32 : i32
      %38 = tpu.iota {dimensions = array<i32: 0>} : vector<8x1xi32>
      %39 = vector.broadcast %37 : i32 to vector<8x1xi32>
      %40 = arith.addi %39, %38 : vector<8x1xi32>
      %c8_i32_21 = arith.constant 8 : i32
      %41 = vector.broadcast %c8_i32_21 : i32 to vector<8x1xi32>
      %42 = arith.cmpi slt, %40, %41 : vector<8x1xi32>
      %c0_22 = arith.constant 0 : index
      %c0_23 = arith.constant 0 : index
      %43 = vector.load %arg6[%c0_22, %c0_23] : memref<8x1xf32, #tpu.memory_space<vmem>>, vector<8x1xf32>
      %c0_24 = arith.constant 0 : index
      %c0_25 = arith.constant 0 : index
      %44 = vector.load %arg7[%c0_24, %c0_25] : memref<8x1xf32, #tpu.memory_space<vmem>>, vector<8x1xf32>
      %45 = math.log %44 : vector<8x1xf32>
      %46 = arith.addf %43, %45 : vector<8x1xf32>
      %c0_26 = arith.constant 0 : index
      %c0_27 = arith.constant 0 : index
      %47 = vector.load %arg8[%c0_26, %c0_27] : memref<8x1xf32, #tpu.memory_space<vmem>>, vector<8x1xf32>
      %48 = arith.subf %46, %47 : vector<8x1xf32>
      %c0_28 = arith.constant 0 : index
      %c0_29 = arith.constant 0 : index
      %49 = vector.load %arg4[%c0_28, %c0_29] : memref<8x1xf32, #tpu.memory_space<vmem>>, vector<8x1xf32>
      %50 = arith.mulf %49, %48 : vector<8x1xf32>
      %cst_30 = arith.constant 0.000000e+00 : f32
      %51 = vector.broadcast %cst_30 : f32 to vector<8x1xf32>
      %52 = arith.select %42, %50, %51 : vector<8x1xi1>, vector<8x1xf32>
      %53 = vector.shape_cast %52 : vector<8x1xf32> to vector<1x8x1xf32>
      %cst_31 = arith.constant dense<0.000000e+00> : vector<1xf32>
      %54 = vector.multi_reduction <add>, %53, %cst_31 [1, 2] : vector<1x8x1xf32> to vector<1xf32>
      %55 = vector.shape_cast %54 : vector<1xf32> to vector<1x1x1xf32>
      %56 = vector.extract %55[0, 0, 0] : f32 from vector<1x1x1xf32>
      %57 = vector.broadcast %56 : f32 to vector<1x1x128xf32>
      %c0_32 = arith.constant 0 : index
      %c0_33 = arith.constant 0 : index
      %c0_34 = arith.constant 0 : index
      %58 = vector.load %arg5[%c0_32, %c0_33, %c0_34] : memref<1x1x128xf32, #tpu.memory_space<vmem>>, vector<1x1x128xf32>
      tpu.vector_store %arg5[%c0_32, %c0_33, %c0_34], %57 {strides = array<i32>} : memref<1x1x128xf32, #tpu.memory_space<vmem>>, vector<1x1x128xf32>,
    } else {
    }
    return
  }
  func.func @transform_0(%arg0: i32, %arg1: i32) -> (i32, i32) {
    %c0_i32 = arith.constant 0 : i32
    return %arg0, %arg1 : i32, i32
  }
  func.func @transform_1(%arg0: i32, %arg1: i32) -> (i32, i32) {
    %c0_i32 = arith.constant 0 : i32
    %c0_i32_0 = arith.constant 0 : i32
    return %arg0, %c0_i32 : i32, i32
  }
  func.func @transform_2(%arg0: i32, %arg1: i32) -> (i32, i32) {
    %c0_i32 = arith.constant 0 : i32
    %c0_i32_0 = arith.constant 0 : i32
    return %arg0, %c0_i32 : i32, i32
  }
  func.func @transform_3(%arg0: i32, %arg1: i32) -> (i32, i32, i32) {
    %c0_i32 = arith.constant 0 : i32
    %c0_i32_0 = arith.constant 0 : i32
    %c0_i32_1 = arith.constant 0 : i32
    return %arg0, %c0_i32, %c0_i32_0 : i32, i32, i32
  }
}

</mosaic_0001>

<bundles_post_ra>
// kernel: tpu_custom_call.1
= control target key start
LH: loop header
LB: loop body
LE: loop exit
PB: predicated region body
PF: predicated region fallthrough
CT: control target
= control target key end

     0   :  { %vm30_vm0 = vcmask 130048   ;;  %s205_s0 = inlined_call_operand.vmem [shape: f32[8,16], index: 0, kind: input, shape index: {}]   ;;  %s206_s1 = inlined_call_operand.vmem [shape: s32[8,1], index: 1, kind: input, shape index: {}]   ;;  %s207_s2 = inlined_call_operand.vmem [shape: f32[8,1], index: 2, kind: input, shape index: {}]   ;;  %s208_s3 = inlined_call_operand.hbm [shape: f32[1,1,128], index: 3, kind: output, shape index: {}]  }
   0x1   :  { %v23_v0 = vld [vmem:[%s205_s0] sm:$0xff] }
   0x2   :  { %8 = vsyncpa [#allocation6], 0  ;;  %v31_v1 = vsel %vm30_vm0, %v23_v0, -inf  ;;  %vm19_vm1 = vcmask 7168   ;;  %v150_v2 = vmov -inf   ;;  %v151_v3 = vmov 0  }
   0x3   :  { %32 = vmax.xlane.f32.xlu0 %v31_v1  ;;  %20 = vst.msk [vmem:[#allocation2] sm:$0xff] %vm19_vm1, %v150_v2  ;;  %119 = vset.pattern.permute.xlu1 %v151_v3  ;;  %v55_v4 = vld [vmem:[%s206_s1] sm:$0xff]  ;;  %v152_v5 = vmov 0.0   ;;  %v25_v13 = vlaneseq  ;;  %s153_s16 = smov [#allocation5]  }
   0x4   :  { %118 = vset.pattern.permute.xlu0 %v151_v3  ;;  %57 = vperm.xlu1 %119, %v55_v4   ;;  %21 = vst.msk [vmem:[#allocation3] sm:$0xff] %vm19_vm1, %v152_v5  ;;  %22 = vst.msk [vmem:[#allocation4] sm:$0xff] %vm19_vm1, %v152_v5  ;;  %v83_v35 = vld [vmem:[%s207_s2] sm:$0xff]  ;;  %s104_s17 = sshll.u32 %s153_s16, 4  ;;  %s105_s17 = int_to_ptr.vmem [resolvable:$true] %s104_s17 }
   0x5   :  { %v26_v14 = vand.u32 127, %v25_v13  ;;  %s126_s2 = scalar_lea.vmem %s105_s17, 16  ;;  %s130_s19 = scalar_lea.vmem %s105_s17, 32 }
   0x6   :  { %p127_p0 = scmp.ne.s32.totalorder %s105_s17, %s126_s2  ;;  %p131_p1 = scmp.lt.s32.totalorder %s105_s17, %s105_s17 }
   0x7   :  { %p132_p2 = scmp.lt.s32.totalorder %s130_s19, %s126_s2 }
   0x9   :  { %p133_p3 = por %p132_p2, %p131_p1 }
   0xa   :  { %v29_v6 = vld [vmem:[#allocation2] sm:$0xff] }
   0xb   :  { %v35_v22 = vld [vmem:[#allocation3] sm:$0xff]  ;;  %v60_v26 = vld [vmem:[#allocation4] sm:$0xff]  ;;  %p134_p4 = pnand %p133_p3, %p127_p0 }
  0x83   :  { %v58_v15 = vpop.permute.xlu1 %57 }
  0x84   :  { %vm59_vm2 = vcmp.eq.s32.totalorder %v26_v14, %v58_v15 }
  0x85   :  { %v61_v17 = vsel %vm59_vm2, %v23_v0, 0.0 }
  0x86   :  { %v62_v19 = vsel %vm30_vm0, %v61_v17, 0.0 }
  0x90   :  { %v33_v7 = vpop.xlane.xlu0 %32 }
  0x91   :  { %v34_v8 = vmax.f32 %v29_v6, %v33_v7 }
  0x93   :  { %v36_v9 = vsub.f32 %v29_v6, %v34_v8  ;;  %54 = vst.msk [vmem:[#allocation2] sm:$0xff] %vm19_vm1, %v34_v8  ;;  %42 = vperm.xlu0 %118, %v34_v8  }
  0x95   :  { %v37_v20 = vmul.f32 1.442695, %v36_v9 }
  0x9a   :  { %v76_v32 = vld [vmem:[#allocation2] sm:$0xff] }
 0x112   :  { %v43_v10 = vpop.permute.xlu0 %42 }
 0x113   :  { %v45_v11 = vsub.f32 %v23_v0, %v43_v10 }
 0x115   :  { %v46_v12 = vmul.f32 1.442695, %v45_v11 }
 0x117   :  { %120 = vpow2.f32 %v46_v12 }
 0x118   :  { %122 = vpow2.f32 %v37_v20 }
 0x121   :  { %v121_v16 = vpop.eup %120 }
 0x122   :  { %v48_v18 = vsel %vm30_vm0, %v121_v16, 0.0  ;;  %v123_v21 = vpop.eup %122 }
 0x123   :  { %49 = vadd.xlane.f32.xlu1 %v48_v18  ;;  %v39_v23 = vmul.f32 %v123_v21, %v35_v22 }
 0x127   :  { %63 = vadd.xlane.f32.xlu1 %v62_v19 }
 0x1b0   :  { %v50_v24 = vpop.xlane.xlu1 %49 }
 0x1b1   :  { %v51_v25 = vadd.f32 %v50_v24, %v39_v23 }
 0x1b3   :  { %53 = vst.msk [vmem:[#allocation3] sm:$0xff] %vm19_vm1, %v51_v25 }
 0x1b4   :  { %v64_v27 = vpop.xlane.xlu1 %63 }
 0x1b5   :  { %v65_v28 = vadd.f32 %v64_v27, %v60_v26 }
 0x1b7   :  { %66 = vst.msk [vmem:[#allocation4] sm:$0xff] %vm19_vm1, %v65_v28 }
 0x1ba   :  { %v77_v29 = vld [vmem:[#allocation3] sm:$0xff] }
 0x1bb   :  { %124 = vlog2.f32 %v77_v29 }
 0x1be   :  { %v81_v33 = vld [vmem:[#allocation4] sm:$0xff] }
 0x1c5   :  { %v125_v30 = vpop.eup %124 }
 0x1c6   :  { %v79_v31 = vmul.f32 0.6931472, %v125_v30 }
 0x1c8   :  { %v80_v34 = vadd.f32 %v79_v31, %v76_v32 }
 0x1ca   :  { %v82_v36 = vsub.f32 %v80_v34, %v81_v33 }
 0x1cc   :  { %v84_v37 = vmul.f32 %v83_v35, %v82_v36 }
 0x1ce   :  { %v86_v38 = vsel %vm19_vm1, %v84_v37, 0.0 }
 0x1cf   :  { %87 = vadd.xlane.f32.xlu1 %v86_v38 }
 0x25c   :  { %v88_v39 = vpop.xlane.xlu1 %87 }
 0x25d   :  { %v89_v40 = vrot.slane %v88_v39, 4 }
 0x25f   :  { %v90_v41 = vadd.f32 %v89_v40, %v88_v39 }
 0x261   :  { %v91_v42 = vrot.slane %v90_v41, 2 }
 0x263   :  { %v92_v43 = vadd.f32 %v91_v42, %v90_v41 }
 0x265   :  { %v93_v44 = vrot.slane %v92_v43, 1 }
 0x267   :  { %v94_v45 = vadd.f32 %v93_v44, %v92_v43 }
 0x269   :  { %112 = vpush %v94_v45 }
 0x29a   :  { %s113_s18 = spop %112 }
 0x29b   :  { %v96_v46 = vstv %s113_s18 }
 0x29c   :  { %97 = vst [vmem:[#allocation5] sm:$0x1] %v96_v46 }
 0x29d   :  { %137 = shalt.err (!%p134_p4)
}
 0x29e   :  { %s138_s22 = scalar_lea.hbm %s208_s3, 16 }
 0x29f   :  { %p139_p5 = scmp.ne.s32.totalorder %s208_s3, %s138_s22  ;;  %p142_p6 = scmp.lt.u32.totalorder %s138_s22, %s208_s3 }
 0x2a1   :  { %p144_p7 = pnand %p142_p6, %p139_p5 }
 0x2a3   :  { %147 = shalt.err (!%p144_p7)
}
 0x2a4   :  { %107 = dma.vmem_to_hbm [thread:$0]  %s105_s17, 16, %s208_s3, [#allocation6]  }
 0x2a5   :  { %148 = dma.done.wait [#allocation6], 16  }
 0x2a6   :  { %149 = vsyncadd [#allocation6], 4294967280 }
 0x2a7   :  { %111 = vsyncpa [#allocation6], 1 }

</bundles_post_ra>
